<compile_context>
chip_gen: v5e
topology: v5e:2x2
jax: 0.10.0
libtpu: 0.0.40
codegen_flags: <defaults>
</compile_context>

<pallas_src>
import functools

import jax
import jax.numpy as jnp
from jax.experimental import pallas as pl
from jax.experimental.pallas import tpu as pltpu

EPS = 1e-6


def _normalize_kernel(x_ref, o_ref, *, inv_n, inv_nm1, eps):
    # x_ref / o_ref: (BB, N) tile, N = F*T.  All statistics are per row.
    x = x_ref[...]
    # No-op for f32 inputs (the common case); single f32 working copy for bf16.
    xf = x if x.dtype == jnp.float32 else x.astype(jnp.float32)

    # ---- pass 1: fused sum / min / max over each row -----------------------
    s = jnp.sum(xf, axis=1, keepdims=True)
    xmin = jnp.min(xf, axis=1, keepdims=True)
    xmax = jnp.max(xf, axis=1, keepdims=True)
    mean = s * inv_n

    # ---- pass 2: two-pass (numerically stable) unbiased variance -----------
    d = xf - mean
    std = jnp.sqrt(jnp.sum(d * d, axis=1, keepdims=True) * inv_nm1)

    # Affine-map algebra (see header): std only feeds the fix test.
    rng = xmax - xmin
    fix = rng > eps * (std + eps)                       # == (nmax - nmin) > eps
    safe_rng = jnp.where(fix, rng, 1.0)                 # per-row, tiny
    scale = jnp.where(fix, 1.0 / safe_rng, 0.0)         # 0-scale => zero output

    # ---- pass 3: apply (branchless; scale==0 handles the degenerate rows) ---
    out = (xf - xmin) * scale
    o_ref[...] = out.astype(o_ref.dtype)


def _pick_block_rows(n_rows, row_bytes, budget_bytes=2 << 20):
    """Rows per grid step: large enough to amortize ~0.35us/step overhead,
    small enough that double-buffered in+out tiles plus f32 temps stay well
    inside the smallest scoped-VMEM default (v5e 16 MiB)."""
    cap = max(1, budget_bytes // max(row_bytes, 1))
    # Keep at least 2 grid steps when there is real work, so both v7x
    # TensorCores get a share (near-zero impact on v5e/v6e).
    if n_rows > 1 and n_rows * row_bytes > (1 << 20):
        cap = min(cap, (n_rows + 1) // 2)
    cap = min(cap, n_rows)
    # Largest divisor of n_rows not exceeding cap -> exact grid, no ragged block.
    for bb in range(cap, 0, -1):
        if n_rows % bb == 0:
            return bb
    return 1


def normalize_melspec(x, eps=EPS):
    """x: (B, F, T) float array. Returns the normalized array, same shape/dtype."""
    B, F, T = x.shape
    n = F * T
    assert n > 1, "NormalizeMelSpec needs >= 2 elements per batch (unbiased std)"

    # Flatten (F, T) -> F*T: free row-major reshape; last dim becomes lane-dense
    # (multiple of 128) for typical mel shapes, avoiding masked partial stores.
    # TODO(synk): for extremely long time axes (one row >> a few MiB) a T-tiled
    # two-phase reduction would be needed instead of whole-row blocks.
    x2 = x.reshape(B, n)
    bb = _pick_block_rows(B, n * x.dtype.itemsize)

    kernel = functools.partial(
        _normalize_kernel,
        inv_n=1.0 / float(n),
        inv_nm1=1.0 / float(n - 1),
        eps=float(eps),
    )

    out2 = pl.pallas_call(
        kernel,
        out_shape=jax.ShapeDtypeStruct((B, n), x.dtype),
        grid_spec=pl.GridSpec(
            grid=(B // bb,),
            in_specs=[pl.BlockSpec((bb, n), lambda i: (i, 0))],
            out_specs=pl.BlockSpec((bb, n), lambda i: (i, 0)),
        ),
        compiler_params=pltpu.CompilerParams(
            dimension_semantics=("parallel",),
        ),
    )(x2)
    return out2.reshape(B, F, T)


def _reference(x, eps=EPS):
    """Pure-JAX reference mirroring the PyTorch forward."""
    x = x.astype(jnp.float32)
    mean = jnp.mean(x, axis=(1, 2), keepdims=True)
    std = jnp.std(x, axis=(1, 2), keepdims=True, ddof=1)
    xstd = (x - mean) / (std + eps)
    nmin = jnp.min(xstd, axis=(1, 2))
    nmax = jnp.max(xstd, axis=(1, 2))
    rng = nmax - nmin
    fix = rng > eps
    nmin_b = nmin[:, None, None]
    rng_b = jnp.where(fix, rng, 1.0)[:, None, None]
    v_fix = (jnp.clip(xstd, nmin[:, None, None], nmax[:, None, None]) - nmin_b) / rng_b
    return jnp.where(fix[:, None, None], v_fix, jnp.zeros_like(v_fix))


if __name__ == "__main__":
    key = jax.random.PRNGKey(0)
    B, F, T = 2, 16, 16  # small (batch, mel_bins, time); F*T = 256 (lane-dense)
    x = jax.random.normal(key, (B, F, T), dtype=jnp.float32) * 3.0 + 1.5

    out = jax.block_until_ready(normalize_melspec(x))
    ref = _reference(x)
    assert out.shape == (B, F, T) and out.dtype == x.dtype
    err = float(jnp.max(jnp.abs(out - ref)))
    assert err < 1e-4, err

    # Second shape: odd dims, F*T not a multiple of 128 (full-dim block is
    # still legal; exercises the masked-store path) plus a degenerate
    # constant-row batch element (fix == False -> all-zero output).
    B2, F2, T2 = 3, 24, 40
    x2 = jax.random.normal(jax.random.PRNGKey(1), (B2, F2, T2), jnp.float32) * 0.5 - 2.0
    x2 = x2.at[1].set(0.75)  # constant slice -> range 0 -> zero output row
    out2 = jax.block_until_ready(normalize_melspec(x2))
    err2 = float(jnp.max(jnp.abs(out2 - _reference(x2))))
    assert err2 < 1e-4, err2

    print("KERNEL_OK")
</pallas_src>

<mosaic_0001>
module attributes {stable_mosaic.version = 11 : i64} {
  func.func @_normalize_kernel(%arg0: i32, %arg1: memref<2x256xf32, #tpu.memory_space<vmem>>, %arg2: memref<2x256xf32, #tpu.memory_space<vmem>>) attributes {dimension_semantics = [#tpu.dimension_semantics<parallel>], iteration_bounds = array<i64: 1>, scalar_prefetch = 0 : i64, scratch_operands = 0 : i64, tpu.core_type = #tpu.core_type<tc>, window_params = [{transform_indices = @transform_0, window_bounds = array<i64: 2, 256>}, {transform_indices = @transform_1, window_bounds = array<i64: 2, 256>}]} {
    %c0 = arith.constant 0 : index
    %c0_0 = arith.constant 0 : index
    %0 = vector.load %arg1[%c0, %c0_0] : memref<2x256xf32, #tpu.memory_space<vmem>>, vector<2x256xf32>
    %cst = arith.constant dense<0.000000e+00> : vector<2xf32>
    %1 = vector.multi_reduction <add>, %0, %cst [1] : vector<2x256xf32> to vector<2xf32>
    %2 = vector.shape_cast %1 : vector<2xf32> to vector<2x1xf32>
    %cst_1 = arith.constant dense<0x7F800000> : vector<2xf32>
    %3 = vector.multi_reduction <minimumf>, %0, %cst_1 [1] : vector<2x256xf32> to vector<2xf32>
    %4 = vector.shape_cast %3 : vector<2xf32> to vector<2x1xf32>
    %cst_2 = arith.constant dense<0xFF800000> : vector<2xf32>
    %5 = vector.multi_reduction <maximumf>, %0, %cst_2 [1] : vector<2x256xf32> to vector<2xf32>
    %6 = vector.shape_cast %5 : vector<2xf32> to vector<2x1xf32>
    %cst_3 = arith.constant 3.906250e-03 : f32
    %7 = vector.broadcast %cst_3 : f32 to vector<2x1xf32>
    %8 = arith.mulf %2, %7 : vector<2x1xf32>
    %9 = vector.broadcast %8 : vector<2x1xf32> to vector<2x256xf32>
    %10 = arith.subf %0, %9 : vector<2x256xf32>
    %11 = arith.mulf %10, %10 : vector<2x256xf32>
    %cst_4 = arith.constant dense<0.000000e+00> : vector<2xf32>
    %12 = vector.multi_reduction <add>, %11, %cst_4 [1] : vector<2x256xf32> to vector<2xf32>
    %13 = vector.shape_cast %12 : vector<2xf32> to vector<2x1xf32>
    %cst_5 = arith.constant 0.00392156886 : f32
    %14 = vector.broadcast %cst_5 : f32 to vector<2x1xf32>
    %15 = arith.mulf %13, %14 : vector<2x1xf32>
    %16 = math.sqrt %15 : vector<2x1xf32>
    %17 = arith.subf %6, %4 : vector<2x1xf32>
    %cst_6 = arith.constant 9.99999997E-7 : f32
    %18 = vector.broadcast %cst_6 : f32 to vector<2x1xf32>
    %19 = arith.addf %16, %18 : vector<2x1xf32>
    %cst_7 = arith.constant 9.99999997E-7 : f32
    %20 = vector.broadcast %cst_7 : f32 to vector<2x1xf32>
    %21 = arith.mulf %20, %19 : vector<2x1xf32>
    %22 = arith.cmpf ogt, %17, %21 : vector<2x1xf32>
    %cst_8 = arith.constant 1.000000e+00 : f32
    %23 = vector.broadcast %cst_8 : f32 to vector<2x1xf32>
    %24 = arith.select %22, %17, %23 : vector<2x1xi1>, vector<2x1xf32>
    %cst_9 = arith.constant 1.000000e+00 : f32
    %25 = vector.broadcast %cst_9 : f32 to vector<2x1xf32>
    %26 = arith.divf %25, %24 : vector<2x1xf32>
    %cst_10 = arith.constant 0.000000e+00 : f32
    %27 = vector.broadcast %cst_10 : f32 to vector<2x1xf32>
    %28 = arith.select %22, %26, %27 : vector<2x1xi1>, vector<2x1xf32>
    %29 = vector.broadcast %4 : vector<2x1xf32> to vector<2x256xf32>
    %30 = arith.subf %0, %29 : vector<2x256xf32>
    %31 = vector.broadcast %28 : vector<2x1xf32> to vector<2x256xf32>
    %32 = arith.mulf %30, %31 : vector<2x256xf32>
    %c0_11 = arith.constant 0 : index
    %c0_12 = arith.constant 0 : index
    %33 = vector.load %arg2[%c0_11, %c0_12] : memref<2x256xf32, #tpu.memory_space<vmem>>, vector<2x256xf32>
    tpu.vector_store %arg2[%c0_11, %c0_12], %32 {strides = array<i32>} : memref<2x256xf32, #tpu.memory_space<vmem>>, vector<2x256xf32>,
    return
  }
  func.func @transform_0(%arg0: i32) -> (i32, i32) {
    %c0_i32 = arith.constant 0 : i32
    %c0_i32_0 = arith.constant 0 : i32
    return %arg0, %c0_i32 : i32, i32
  }
  func.func @transform_1(%arg0: i32) -> (i32, i32) {
    %c0_i32 = arith.constant 0 : i32
    %c0_i32_0 = arith.constant 0 : i32
    return %arg0, %c0_i32 : i32, i32
  }
}

</mosaic_0001>

<bundles_post_ra>
// kernel: tpu_custom_call.1
= control target key start
LH: loop header
LB: loop body
LE: loop exit
PB: predicated region body
PF: predicated region fallthrough
CT: control target
= control target key end

     0   :  { %6 = vsyncpa [#allocation3], 0  ;;  %s237_s0 = inlined_call_operand.hbm [shape: f32[2,256], index: 0, kind: input, shape index: {}]   ;;  %s238_s1 = inlined_call_operand.hbm [shape: f32[2,256], index: 1, kind: output, shape index: {}]  }
   0x1   :  { %7 = vsyncpa [#allocation4], 0  ;;  %s13_s8 = sshll.u32 %s237_s0, 4  ;;  %s201_s9 = smov [#allocation2]   ;;  %s14_s8 = int_to_ptr.hbm [resolvable:$true] %s13_s8 }
   0x2   :  { %s15_s10 = sshll.u32 %s201_s9, 4  ;;  %s16_s10 = int_to_ptr.vmem [resolvable:$true] %s15_s10 }
   0x3   :  { %18 = dma.hbm_to_vmem [thread:$0]  %s14_s8, 64, %s16_s10, [#allocation3]  }
   0x4   :  { %197 = dma.done.wait [#allocation3], 64  }
   0x5   :  { %198 = vsyncadd [#allocation3], 4294967232  ;;  %v217_v0 = vld [vmem:[#allocation2] sm:$0xf]  ;;  %vm30_vm0 = vcmask 1041408   ;;  %s203_s0 = smov [#allocation5]  }
   0x6   :  { %25 = vst [vmem:[#allocation1] ss:$4 sm:$0xff] %v217_v0  ;;  %v202_v15 = vmov 269488144   ;;  %s130_s11 = sshll.u32 %s203_s0, 4  ;;  %s132_s14 = sshll.u32 %s238_s1, 4  ;;  %s131_s11 = int_to_ptr.vmem [resolvable:$true] %s130_s11  ;;  %s133_s14 = int_to_ptr.hbm [resolvable:$true] %s132_s14 }
   0x7   :  { %v59_v16 = vunpack.c.l.s4 %v202_v15 }
   0x9   :  { %v60_v18 = vunpack.c.0.s8 %v59_v16 }
   0xd   :  { %v26_v1 = vld.sshfl [vmem:[#allocation1] sm:$0xff pattern:$0x73625140]  ;;  %v27_v2 = vld.sshfl [vmem:[#allocation1 + $0x8] sm:$0xff pattern:$0x73625140] }
   0xe   :  { %v31_v3 = vsel %vm30_vm0, %v26_v1, 0.0  ;;  %v32_v4 = vsel %vm30_vm0, %v27_v2, 0.0  ;;  %36 = vst [vmem:[#allocation1] ss:$4 sm:$0xff] %v217_v0 }
   0xf   :  { %v33_v5 = vadd.f32 %v32_v4, %v31_v3 }
  0x11   :  { %34 = vadd.xlane.f32.xlu0 %v33_v5 }
  0x15   :  { %v37_v6 = vld.sshfl [vmem:[#allocation1] sm:$0xff pattern:$0x73625140]  ;;  %v38_v7 = vld.sshfl [vmem:[#allocation1 + $0x8] sm:$0xff pattern:$0x73625140] }
  0x16   :  { %46 = vst [vmem:[#allocation1] ss:$4 sm:$0xff] %v217_v0  ;;  %v41_v8 = vsel %vm30_vm0, %v37_v6, inf  ;;  %v42_v9 = vsel %vm30_vm0, %v38_v7, inf }
  0x17   :  { %v43_v10 = vmin.f32 %v41_v8, %v42_v9 }
  0x19   :  { %44 = vmin.xlane.f32.xlu1 %v43_v10 }
  0x1d   :  { %v47_v11 = vld.sshfl [vmem:[#allocation1] sm:$0xff pattern:$0x73625140]  ;;  %v48_v12 = vld.sshfl [vmem:[#allocation1 + $0x8] sm:$0xff pattern:$0x73625140] }
  0x1e   :  { %v51_v13 = vsel %vm30_vm0, %v47_v11, -inf  ;;  %v52_v14 = vsel %vm30_vm0, %v48_v12, -inf }
  0x1f   :  { %v53_v17 = vmax.f32 %v51_v13, %v52_v14 }
  0x21   :  { %54 = vmax.xlane.f32.xlu1 %v53_v17 }
  0x84   :  { %v35_v19 = vpop.xlane.xlu0 %34 }
  0x85   :  { %v56_v20 = vmul.f32 0.00390625, %v35_v19 }
  0x87   :  { %v61_v21 = vperm.slane %v56_v20, %v60_v18 }
  0x89   :  { %v63_v22 = vsub.f32 %v217_v0, %v61_v21 }
  0x8b   :  { %v64_v23 = vmul.f32 %v63_v22, %v63_v22 }
  0x8c   :  { %v45_v34 = vpop.xlane.xlu1 %44 }
  0x8d   :  { %66 = vst [vmem:[#allocation1] ss:$4 sm:$0xff] %v64_v23  ;;  %v114_v54 = vperm.slane %v45_v34, %v60_v18 }
  0x8f   :  { %v116_v59 = vsub.f32 %v217_v0, %v114_v54 }
  0x94   :  { %v67_v24 = vld.sshfl [vmem:[#allocation1] sm:$0xff pattern:$0x73625140]  ;;  %v68_v25 = vld.sshfl [vmem:[#allocation1 + $0x8] sm:$0xff pattern:$0x73625140]  ;;  %v55_v41 = vpop.xlane.xlu1 %54 }
  0x95   :  { %v71_v26 = vsel %vm30_vm0, %v67_v24, 0.0  ;;  %v72_v27 = vsel %vm30_vm0, %v68_v25, 0.0  ;;  %v89_v44 = vsub.f32 %v55_v41, %v45_v34 }
  0x96   :  { %v73_v28 = vadd.f32 %v72_v27, %v71_v26 }
  0x98   :  { %74 = vadd.xlane.f32.xlu0 %v73_v28 }
 0x10b   :  { %v75_v29 = vpop.xlane.xlu0 %74 }
 0x10c   :  { %v76_v30 = vmul.f32 0.003921569, %v75_v29 }
 0x10e   :  { %145 = vrsqrt.f32 %v76_v30  ;;  %vm84_vm1 = vcmp.eq.f32.partialorder %v76_v30, inf  ;;  %v87_v39 = vand.u32 2147483648, %v76_v30  ;;  %vm86_vm2 = vcmp.eq.f32.partialorder %v76_v30, 0.0 }
 0x114   :  { %v146_v31 = vpop.eup %145 }
 0x115   :  { %v78_v32 = vmul.f32 %v146_v31, %v76_v30 }
 0x117   :  { %v79_v33 = vmul.f32 %v146_v31, %v78_v32 }
 0x119   :  { %v80_v35 = vmul.f32 0.5, %v79_v33 }
 0x11b   :  { %v81_v36 = vsub.f32 1.5, %v80_v35 }
 0x11d   :  { %v82_v37 = vmul.f32 %v146_v31, %v81_v36 }
 0x11f   :  { %v83_v38 = vmul.f32 %v82_v37, %v76_v30 }
 0x121   :  { %v85_v40 = vsel %vm84_vm1, %v76_v30, %v83_v38 }
 0x122   :  { %v88_v42 = vsel %vm86_vm2, %v87_v39, %v85_v40 }
 0x123   :  { %v90_v43 = vadd.f32 1e-06, %v88_v42 }
 0x125   :  { %v91_v45 = vmul.f32 1e-06, %v90_v43 }
 0x127   :  { %vm92_vm3 = vcmp.gt.f32.partialorder %v89_v44, %v91_v45 }
 0x128   :  { %v93_v46 = vsel %vm92_vm3, %v89_v44, 1.0 }
 0x129   :  { %147 = vrcp.f32 %v93_v46  ;;  %v105_v50 = vand.u32 2147483648, %v93_v46  ;;  %v103_v52 = vand.u32 2147483647, %v93_v46  ;;  %vm99_vm5 = vweird.f32 %v93_v46 }
 0x12b   :  { %v106_v55 = vor.u32 1.1754944e-38, %v105_v50  ;;  %vm104_vm7 = vcmp.eq.f32.partialorder %v103_v52, 8.507059e+37 }
 0x12f   :  { %v148_v47 = vpop.eup %147 }
 0x130   :  { %v95_v48 = vmul.f32 %v148_v47, %v93_v46  ;;  %vm100_vm4 = vweird.f32 %v148_v47 }
 0x131   :  { %vm101_vm6 = vmor %vm99_vm5, %vm100_vm4 }
 0x132   :  { %v96_v49 = vsub.f32 1.0, %v95_v48 }
 0x134   :  { %v97_v51 = vmul.f32 %v148_v47, %v96_v49 }
 0x136   :  { %v98_v53 = vadd.f32 %v148_v47, %v97_v51 }
 0x138   :  { %v102_v56 = vsel %vm101_vm6, %v148_v47, %v98_v53 }
 0x139   :  { %v107_v57 = vsel %vm104_vm7, %v106_v55, %v102_v56 }
 0x13a   :  { %v109_v58 = vsel %vm92_vm3, %v107_v57, 0.0 }
 0x13b   :  { %v121_v60 = vperm.slane %v109_v58, %v60_v18 }
 0x13d   :  { %v123_v61 = vmul.f32 %v121_v60, %v116_v59 }
 0x13f   :  { %124 = vst [vmem:[#allocation5] sm:$0xf] %v123_v61 }
 0x140   :  { %135 = dma.vmem_to_hbm [thread:$0]  %s131_s11, 64, %s133_s14, [#allocation4]  }
 0x141   :  { %199 = dma.done.wait [#allocation4], 64  }
 0x142   :  { %200 = vsyncadd [#allocation4], 4294967232 }
 0x143   :  { %140 = vsyncpa [#allocation3], 1 }
 0x144   :  { %141 = vsyncpa [#allocation4], 1 }

</bundles_post_ra>
